<compile_context>
chip_gen: v7x
topology: tpu7x:2x2x1
jax: 0.10.0
libtpu: 0.0.40
codegen_flags: <defaults>
</compile_context>

<pallas_src>
import functools

import jax
import jax.numpy as jnp
from jax.experimental import pallas as pl
from jax.experimental.pallas import tpu as pltpu

EPS = 1e-5


def _vmem_capacity_bytes():
    """Physical VMEM per TensorCore (v5e/v6e: 128 MiB, v7x: 64 MiB)."""
    try:
        cap = getattr(pltpu.get_tpu_info(), "vmem_capacity_bytes", None)
        if cap:
            return int(cap)
    except Exception:
        pass
    return 64 << 20  # conservative (v7x-sized) fallback


def _sublane(itemsize):
    # Rows per vreg for this dtype: f32 -> 8, bf16 -> 16, int8/fp8 -> 32.
    return max(8, 32 // int(itemsize))


def _choose_row_tile(n, d_lanes, itemsize, block_budget):
    """Rows per block: as large as the per-block byte budget allows, but with
    at least ~4 grid steps so pipelining / megacore sharding are effective."""
    sub = _sublane(itemsize)
    if n <= sub:
        return int(n)  # full-dim block: no ragged edge, no sublane waste
    rows = (block_budget // max(1, d_lanes * itemsize)) // sub * sub
    tn = int(max(sub, min(1024, rows)))
    # Keep >= 4 grid steps when the batch allows it (double-buffering + v7x TCs).
    tn = min(tn, max(sub, (n // 4) // sub * sub))
    # Never exceed the (sublane-rounded) batch itself.
    tn = min(tn, pl.cdiv(n, sub) * sub)
    return int(tn)


# ----------------------------------------------------------------------------
# Path A: the whole (padded) feature row fits comfortably in one VMEM block.
# ----------------------------------------------------------------------------
def _ln_rows_kernel(x_ref, g_ref, b_ref, o_ref, *, d_true, n_zero_pad, eps):
    x = x_ref[...].astype(jnp.float32)
    inv_d = jnp.float32(1.0 / d_true)
    mean = jnp.sum(x, axis=1, keepdims=True) * inv_d
    xc = x - mean
    ss = jnp.sum(xc * xc, axis=1, keepdims=True)
    if n_zero_pad:  # static: remove exact contribution of zero-padded lanes
        ss = ss - jnp.float32(n_zero_pad) * mean * mean
    var = jnp.maximum(ss * inv_d, 0.0)
    rstd = jax.lax.rsqrt(var + jnp.float32(eps))
    y = g_ref[...].astype(jnp.float32) * (xc * rstd) + b_ref[...].astype(jnp.float32)
    o_ref[...] = y.astype(o_ref.dtype)


# ----------------------------------------------------------------------------
# Path B: D is too large for a resident row -> two-phase, D-chunked kernel.
#   grid = (row_tiles, phase, d_chunks); phase 0 accumulates stats in scratch,
#   phase 1 re-streams the chunks and applies the normalization.
# ----------------------------------------------------------------------------
def _ln_chunked_kernel(x_ref, g_ref, b_ref, o_ref,
                       s_ref, ss_ref, mean_ref, rstd_ref, *, d_true, eps):
    p = pl.program_id(1)
    k = pl.program_id(2)
    nk = pl.num_programs(2)

    @pl.when(jnp.logical_and(p == 0, k == 0))
    def _():
        s_ref[...] = jnp.zeros_like(s_ref)
        ss_ref[...] = jnp.zeros_like(ss_ref)

    @pl.when(p == 0)
    def _():
        x = x_ref[...].astype(jnp.float32)
        s_ref[...] += jnp.sum(x, axis=1, keepdims=True)
        ss_ref[...] += jnp.sum(x * x, axis=1, keepdims=True)

    @pl.when(jnp.logical_and(p == 0, k == nk - 1))
    def _():
        inv_d = jnp.float32(1.0 / d_true)
        mean = s_ref[...] * inv_d
        var = jnp.maximum(ss_ref[...] * inv_d - mean * mean, 0.0)
        mean_ref[...] = mean
        rstd_ref[...] = jax.lax.rsqrt(var + jnp.float32(eps))

    @pl.when(p == 1)
    def _():
        x = x_ref[...].astype(jnp.float32)
        xh = (x - mean_ref[...]) * rstd_ref[...]
        o_ref[...] = (g_ref[...].astype(jnp.float32) * xh
                      + b_ref[...].astype(jnp.float32)).astype(o_ref.dtype)


def layer_norm_nchw(x, gamma, beta, eps=EPS, *, d_block=None):
    """LayerNorm over (C,H,W) per sample, matching the PyTorch module's 4D path.

    x: (N, C, H, W); gamma/beta: (1, C, 1, 1).
    d_block: optional forced lane-chunk size (multiple of 128) to exercise the
             D-chunked path on small shapes.
    """
    N, C, H, W = x.shape
    D = C * H * W
    dtype = x.dtype
    itemsize = jnp.dtype(dtype).itemsize
    sub = _sublane(itemsize)

    vmem_cap = _vmem_capacity_bytes()
    # Per-block input byte budget (HBM-bound regime: bigger blocks -> closer to
    # roofline), generation aware.
    block_budget = (8 << 20) if vmem_cap >= (96 << 20) else (4 << 20)
    # Scoped VMEM limit: ~48 MiB on v7x (64 MiB physical), ~96 MiB on v5e/v6e.
    vmem_limit = int(min(max(vmem_cap * 3 // 4, 32 << 20), 100 << 20))

    d_pad = pl.cdiv(D, 128) * 128
    chunked = (d_block is not None) or (sub * d_pad * itemsize > block_budget)

    if chunked:
        if d_block is not None:
            td = int(d_block)
            if td % 128 != 0:
                raise ValueError("d_block must be a multiple of 128")
        else:
            td = max(128, (block_budget // (sub * itemsize)) // 128 * 128)
        nk = pl.cdiv(d_pad, td)
        td = pl.cdiv(pl.cdiv(d_pad, nk), 128) * 128
        d_final = nk * td
    else:
        d_final = d_pad

    x2 = x.reshape(N, D)
    g2 = jnp.broadcast_to(gamma, (1, C, H, W)).reshape(1, D)
    b2 = jnp.broadcast_to(beta, (1, C, H, W)).reshape(1, D)
    if d_final != D:
        # Zero-pad the lane axis only (no batch pad): zero lanes contribute 0 to
        # the sums; zero gamma/beta pads make padded outputs 0 (stripped below).
        x2 = jnp.pad(x2, ((0, 0), (0, d_final - D)))
        g2 = jnp.pad(g2, ((0, 0), (0, d_final - D)))
        b2 = jnp.pad(b2, ((0, 0), (0, d_final - D)))

    if not chunked:
        tn = _choose_row_tile(N, d_final, itemsize, block_budget)
        kernel = functools.partial(_ln_rows_kernel, d_true=float(D),
                                   n_zero_pad=int(d_final - D), eps=float(eps))
        # NOTE: if profiling still shows exposed DMA between steps, add
        # pipeline_mode=pl.Buffered(3) to the x BlockSpec before shrinking tiles.
        out = pl.pallas_call(
            kernel,
            out_shape=jax.ShapeDtypeStruct((N, d_final), dtype),
            grid_spec=pltpu.PrefetchScalarGridSpec(
                num_scalar_prefetch=0,
                grid=(pl.cdiv(N, tn),),
                in_specs=[
                    pl.BlockSpec((tn, d_final), lambda i: (i, 0)),
                    pl.BlockSpec((1, d_final), lambda i: (0, 0)),
                    pl.BlockSpec((1, d_final), lambda i: (0, 0)),
                ],
                out_specs=pl.BlockSpec((tn, d_final), lambda i: (i, 0)),
            ),
            compiler_params=pltpu.CompilerParams(
                dimension_semantics=("parallel",),
                vmem_limit_bytes=vmem_limit,
            ),
        )(x2, g2, b2)
    else:
        tn = _choose_row_tile(N, td, itemsize, block_budget)
        kernel = functools.partial(_ln_chunked_kernel, d_true=float(D), eps=float(eps))
        out = pl.pallas_call(
            kernel,
            out_shape=jax.ShapeDtypeStruct((N, d_final), dtype),
            grid_spec=pltpu.PrefetchScalarGridSpec(
                num_scalar_prefetch=0,
                grid=(pl.cdiv(N, tn), 2, nk),
                in_specs=[
                    pl.BlockSpec((tn, td), lambda i, p, k: (i, k)),
                    pl.BlockSpec((1, td), lambda i, p, k: (0, k)),
                    pl.BlockSpec((1, td), lambda i, p, k: (0, k)),
                ],
                # Phase 0 parks the output index at (i, 0) so no garbage block is
                # ever written back; phase 1 visits (i, k) and writes each once.
                out_specs=pl.BlockSpec((tn, td), lambda i, p, k: (i, k * p)),
                scratch_shapes=[
                    pltpu.VMEM((tn, 1), jnp.float32),   # running sum
                    pltpu.VMEM((tn, 1), jnp.float32),   # running sum of squares
                    pltpu.VMEM((tn, 1), jnp.float32),   # mean
                    pltpu.VMEM((tn, 1), jnp.float32),   # rstd
                ],
            ),
            compiler_params=pltpu.CompilerParams(
                dimension_semantics=("parallel", "arbitrary", "arbitrary"),
                vmem_limit_bytes=vmem_limit,
            ),
        )(x2, g2, b2)

    return out[:, :D].reshape(N, C, H, W)

# TODO(synk): the module's 2D branch relies on PyTorch's shape-dependent
# (N,F)x(N,) broadcast (mean over dim=1, var over dim=0; only valid when N==F);
# only the 4D NCHW path is implemented here.


def _reference(x, gamma, beta, eps=EPS):
    mean = jnp.mean(x, axis=(1, 2, 3), keepdims=True)
    var = jnp.mean((x - mean) ** 2, axis=(1, 2, 3), keepdims=True)
    return gamma * (x - mean) / jnp.sqrt(var + eps) + beta


if __name__ == "__main__":
    key = jax.random.PRNGKey(0)
    k0, k1 = jax.random.split(key)

    # Shapes implied by the module's 4D (NCHW) path.
    N, C, H, W = 2, 4, 16, 16
    x = jax.random.normal(k0, (N, C, H, W), dtype=jnp.float32)
    gamma = (1.0 + 0.1 * jnp.arange(C, dtype=jnp.float32)).reshape(1, C, 1, 1)
    beta = (0.01 * jnp.arange(C, dtype=jnp.float32)).reshape(1, C, 1, 1)

    y = jax.block_until_ready(layer_norm_nchw(x, gamma, beta))
    y_ref = _reference(x, gamma, beta)
    assert y.shape == (N, C, H, W)
    assert jnp.allclose(y, y_ref, atol=1e-5, rtol=1e-5), "mismatch vs reference (resident path)"

    # Exercise the D-chunked (large feature map) path on a small shape by
    # forcing 128-lane chunks.
    N2, C2, H2, W2 = 16, 8, 8, 8
    x2 = jax.random.normal(k1, (N2, C2, H2, W2), dtype=jnp.float32)
    g2 = (1.0 + 0.05 * jnp.arange(C2, dtype=jnp.float32)).reshape(1, C2, 1, 1)
    b2 = (0.02 * jnp.arange(C2, dtype=jnp.float32)).reshape(1, C2, 1, 1)
    y2 = jax.block_until_ready(layer_norm_nchw(x2, g2, b2, d_block=128))
    y2_ref = _reference(x2, g2, b2)
    assert jnp.allclose(y2, y2_ref, atol=1e-5, rtol=1e-5), "mismatch vs reference (chunked path)"

    print("KERNEL_OK")
</pallas_src>

<mosaic_0001>
module attributes {stable_mosaic.version = 11 : i64} {
  func.func @_ln_rows_kernel(%arg0: i32, %arg1: memref<2x1024xf32, #tpu.memory_space<vmem>>, %arg2: memref<1x1024xf32, #tpu.memory_space<vmem>>, %arg3: memref<1x1024xf32, #tpu.memory_space<vmem>>, %arg4: memref<2x1024xf32, #tpu.memory_space<vmem>>) attributes {dimension_semantics = [#tpu.dimension_semantics<parallel>], iteration_bounds = array<i64: 1>, scalar_prefetch = 0 : i64, scratch_operands = 0 : i64, tpu.core_type = #tpu.core_type<tc>, window_params = [{transform_indices = @transform_0, window_bounds = array<i64: 2, 1024>}, {pipeline_mode = #tpu.pipeline_mode<synchronous>, transform_indices = @transform_1, window_bounds = array<i64: 1, 1024>}, {pipeline_mode = #tpu.pipeline_mode<synchronous>, transform_indices = @transform_2, window_bounds = array<i64: 1, 1024>}, {transform_indices = @transform_3, window_bounds = array<i64: 2, 1024>}]} {
    %c0 = arith.constant 0 : index
    %c0_0 = arith.constant 0 : index
    %0 = vector.load %arg1[%c0, %c0_0] : memref<2x1024xf32, #tpu.memory_space<vmem>>, vector<2x1024xf32>
    %cst = arith.constant dense<0.000000e+00> : vector<2xf32>
    %1 = vector.multi_reduction <add>, %0, %cst [1] : vector<2x1024xf32> to vector<2xf32>
    %2 = vector.shape_cast %1 : vector<2xf32> to vector<2x1xf32>
    %cst_1 = arith.constant 9.765625E-4 : f32
    %3 = vector.broadcast %cst_1 : f32 to vector<2x1xf32>
    %4 = arith.mulf %2, %3 : vector<2x1xf32>
    %5 = vector.broadcast %4 : vector<2x1xf32> to vector<2x1024xf32>
    %6 = arith.subf %0, %5 : vector<2x1024xf32>
    %7 = arith.mulf %6, %6 : vector<2x1024xf32>
    %cst_2 = arith.constant dense<0.000000e+00> : vector<2xf32>
    %8 = vector.multi_reduction <add>, %7, %cst_2 [1] : vector<2x1024xf32> to vector<2xf32>
    %9 = vector.shape_cast %8 : vector<2xf32> to vector<2x1xf32>
    %cst_3 = arith.constant 9.765625E-4 : f32
    %10 = vector.broadcast %cst_3 : f32 to vector<2x1xf32>
    %11 = arith.mulf %9, %10 : vector<2x1xf32>
    %cst_4 = arith.constant 0.000000e+00 : f32
    %12 = vector.broadcast %cst_4 : f32 to vector<2x1xf32>
    %13 = arith.maximumf %11, %12 : vector<2x1xf32>
    %cst_5 = arith.constant 9.99999974E-6 : f32
    %14 = vector.broadcast %cst_5 : f32 to vector<2x1xf32>
    %15 = arith.addf %13, %14 : vector<2x1xf32>
    %16 = math.rsqrt %15 : vector<2x1xf32>
    %c0_6 = arith.constant 0 : index
    %c0_7 = arith.constant 0 : index
    %17 = vector.load %arg2[%c0_6, %c0_7] : memref<1x1024xf32, #tpu.memory_space<vmem>>, vector<1x1024xf32>
    %18 = vector.broadcast %16 : vector<2x1xf32> to vector<2x1024xf32>
    %19 = arith.mulf %6, %18 : vector<2x1024xf32>
    %20 = vector.broadcast %17 : vector<1x1024xf32> to vector<2x1024xf32>
    %21 = arith.mulf %20, %19 : vector<2x1024xf32>
    %c0_8 = arith.constant 0 : index
    %c0_9 = arith.constant 0 : index
    %22 = vector.load %arg3[%c0_8, %c0_9] : memref<1x1024xf32, #tpu.memory_space<vmem>>, vector<1x1024xf32>
    %23 = vector.broadcast %22 : vector<1x1024xf32> to vector<2x1024xf32>
    %24 = arith.addf %21, %23 : vector<2x1024xf32>
    %c0_10 = arith.constant 0 : index
    %c0_11 = arith.constant 0 : index
    %25 = vector.load %arg4[%c0_10, %c0_11] : memref<2x1024xf32, #tpu.memory_space<vmem>>, vector<2x1024xf32>
    tpu.vector_store %arg4[%c0_10, %c0_11], %24 {strides = array<i32>} : memref<2x1024xf32, #tpu.memory_space<vmem>>, vector<2x1024xf32>,
    return
  }
  func.func @transform_0(%arg0: i32) -> (i32, i32) {
    %c0_i32 = arith.constant 0 : i32
    %c0_i32_0 = arith.constant 0 : i32
    return %arg0, %c0_i32 : i32, i32
  }
  func.func @transform_1(%arg0: i32) -> (i32, i32) {
    %c0_i32 = arith.constant 0 : i32
    %c0_i32_0 = arith.constant 0 : i32
    %c0_i32_1 = arith.constant 0 : i32
    return %c0_i32, %c0_i32_0 : i32, i32
  }
  func.func @transform_2(%arg0: i32) -> (i32, i32) {
    %c0_i32 = arith.constant 0 : i32
    %c0_i32_0 = arith.constant 0 : i32
    %c0_i32_1 = arith.constant 0 : i32
    return %c0_i32, %c0_i32_0 : i32, i32
  }
  func.func @transform_3(%arg0: i32) -> (i32, i32) {
    %c0_i32 = arith.constant 0 : i32
    %c0_i32_0 = arith.constant 0 : i32
    return %arg0, %c0_i32 : i32, i32
  }
}

</mosaic_0001>

<bundles_post_ra>
// kernel: tpu_custom_call.1
= control target key start
LH: loop header
LB: loop body
LE: loop exit
PB: predicated region body
PF: predicated region fallthrough
CT: control target
= control target key end

     0   :  { %8 = vsyncpa [#allocation3], 0  ;;  %s634_s0 = inlined_call_operand.hbm [shape: f32[2,1024], index: 0, kind: input, shape index: {}]   ;;  %s635_s1 = inlined_call_operand.hbm [shape: f32[1,1024], index: 1, kind: input, shape index: {}]   ;;  %s636_s2 = inlined_call_operand.hbm [shape: f32[1,1024], index: 2, kind: input, shape index: {}]   ;;  %s637_s3 = inlined_call_operand.hbm [shape: f32[2,1024], index: 3, kind: output, shape index: {}]  }
   0x1   :  { %9 = vsyncpa [#allocation6], 0 }
   0x2   :  { %10 = vsyncpa [#allocation4], 0  ;;  %s514_s12 = smov [#allocation5]   ;;  %s515_s14 = smov [#allocation2]  }
   0x3   :  { %s27_s13 = sshll.u32 %s514_s12, 4  ;;  %s17_s15 = sshll.u32 %s515_s14, 4  ;;  %s28_s13 = int_to_ptr.vmem [resolvable:$true] %s27_s13  ;;  %s18_s15 = int_to_ptr.vmem [resolvable:$true] %s17_s15 }
   0x4   :  { %s420_s18 = scalar_lea.hbm %s635_s1, 128 }
   0x5   :  { %p421_p0 = scmp.ne.s32.totalorder %s635_s1, %s420_s18  ;;  %p424_p1 = scmp.lt.u32.totalorder %s420_s18, %s635_s1 }
   0x7   :  { %p426_p2 = pnand %p424_p1, %p421_p0 }
   0x9   :  { %429 = shalt.err (!%p426_p2)
}
   0xa   :  { %s430_s23 = scalar_lea.vmem %s28_s13, 128  ;;  %p435_p4 = scmp.lt.s32.totalorder %s28_s13, %s28_s13 }
   0xb   :  { %p431_p3 = scmp.ne.s32.totalorder %s28_s13, %s430_s23  ;;  %p436_p5 = scmp.lt.s32.totalorder %s430_s23, %s430_s23 }
   0xd   :  { %p437_p6 = por %p436_p5, %p435_p4 }
   0xf   :  { %p438_p7 = pnand %p437_p6, %p431_p3 }
  0x11   :  { %441 = shalt.err (!%p438_p7)
}
  0x12   :  { %30 = dma.hbm_to_vmem [thread:$0]  %s635_s1, 128, %s28_s13, [#allocation6]  }
  0x13   :  { %s442_s28 = scalar_lea.hbm %s634_s0, 256 }
  0x14   :  { %p443_p8 = scmp.ne.s32.totalorder %s634_s0, %s442_s28  ;;  %p446_p9 = scmp.lt.u32.totalorder %s442_s28, %s634_s0 }
  0x16   :  { %p448_p10 = pnand %p446_p9, %p443_p8 }
  0x18   :  { %451 = shalt.err (!%p448_p10)
}
  0x19   :  { %s452_s6 = scalar_lea.vmem %s18_s15, 256  ;;  %p457_p12 = scmp.lt.s32.totalorder %s18_s15, %s18_s15 }
  0x1a   :  { %p453_p11 = scmp.ne.s32.totalorder %s18_s15, %s452_s6  ;;  %p458_p13 = scmp.lt.s32.totalorder %s452_s6, %s452_s6 }
  0x1c   :  { %p459_p0 = por %p458_p13, %p457_p12 }
  0x1e   :  { %p460_p1 = pnand %p459_p0, %p453_p11 }
  0x20   :  { %463 = shalt.err (!%p460_p1)
}
  0x21   :  { %20 = dma.hbm_to_vmem [thread:$0]  %s634_s0, 256, %s18_s15, [#allocation3]  }
  0x22   :  { %s516_s8 = smov [#allocation7]   ;;  %s464_s12 = scalar_lea.hbm %s636_s2, 128 }
  0x23   :  { %s37_s9 = sshll.u32 %s516_s8, 4  ;;  %p465_p2 = scmp.ne.s32.totalorder %s636_s2, %s464_s12  ;;  %s38_s9 = int_to_ptr.vmem [resolvable:$true] %s37_s9 }
  0x24   :  { %p468_p3 = scmp.lt.u32.totalorder %s464_s12, %s636_s2 }
  0x26   :  { %p470_p4 = pnand %p468_p3, %p465_p2 }
  0x28   :  { %473 = shalt.err (!%p470_p4)
}
  0x29   :  { %s474_s18 = scalar_lea.vmem %s38_s9, 128  ;;  %p479_p6 = scmp.lt.s32.totalorder %s38_s9, %s38_s9 }
  0x2a   :  { %p475_p5 = scmp.ne.s32.totalorder %s38_s9, %s474_s18  ;;  %p480_p7 = scmp.lt.s32.totalorder %s474_s18, %s474_s18 }
  0x2c   :  { %p481_p8 = por %p480_p7, %p479_p6 }
  0x2e   :  { %p482_p9 = pnand %p481_p8, %p475_p5 }
  0x30   :  { %485 = shalt.err (!%p482_p9)
}
  0x31   :  { %40 = dma.hbm_to_vmem [thread:$0]  %s636_s2, 128, %s38_s9, [#allocation6]  }
  0x32   :  { %508 = dma.done.wait [#allocation3], 256  }
  0x33   :  { %509 = vsyncadd [#allocation3], 4294967040 }
  0x34   :  { %510 = dma.done.wait [#allocation6], 256  }
  0x35   :  { %511 = vsyncadd [#allocation6], 4294967040  ;;  %v58_v0 = vlaneseq  ;;  %v517_v1 = vmov 1983009808   ;;  %v50_v6 = vld [vmem:[#allocation2] sm:$0xff]  ;;  %v51_v7 = vld [vmem:[#allocation2 + $0x8] sm:$0xff] }
  0x36   :  { %v56_v2 = vunpack.c.l.s4 %v517_v1  ;;  %v54_v8 = vcombine.high %v50_v6, %v50_v6  ;;  %vm96_vm0 = vcmask 1041408   ;;  %v71_v12 = vcombine.high %v51_v7, %v51_v7  ;;  %s519_s2 = smov [#allocation8]  }
  0x37   :  { %v576_v3 = vshrl.u32 %v58_v0, 7  ;;  %v518_v33 = vmov 269488144   ;;  %s400_s19 = sshll.u32 %s519_s2, 4  ;;  %s401_s19 = int_to_ptr.vmem [resolvable:$true] %s400_s19 }
  0x38   :  { %v57_v4 = vunpack.c.0.s8 %v56_v2  ;;  %v117_v34 = vunpack.c.l.s4 %v518_v33  ;;  %s486_s20 = scalar_lea.vmem %s401_s19, 256  ;;  %p491_p11 = scmp.lt.s32.totalorder %s401_s19, %s401_s19 }
  0x39   :  { %p487_p10 = scmp.ne.s32.totalorder %s401_s19, %s486_s20  ;;  %p492_p12 = scmp.lt.s32.totalorder %s486_s20, %s486_s20 }
  0x3a   :  { %v579_v5 = vsub.s32 %v57_v4, %v576_v3  ;;  %v118_v35 = vunpack.c.0.s8 %v117_v34 }
  0x3b   :  { %p493_p13 = por %p492_p12, %p491_p11 }
  0x3c   :  { %v61_v9 = vrot.slane %v50_v6, %v579_v5  ;;  %v68_v10 = vrot.slane %v54_v8, %v579_v5  ;;  %v78_v13 = vrot.slane %v51_v7, %v579_v5  ;;  %v85_v19 = vrot.slane %v71_v12, %v579_v5 }
  0x3d   :  { %v121_v36 = vsub.s32 %v118_v35, %v576_v3  ;;  %v212_v12 = vsub.s32 1, %v576_v3  ;;  %p494_p0 = pnand %p493_p13, %p487_p10 }
  0x3e   :  { %v69_v11 = vcombine.high %v61_v9, %v61_v9  ;;  %v97_v14 = vsel %vm96_vm0, %v61_v9, 0.0  ;;  %v70_v15 = vcombine.high %v68_v10, %v68_v10  ;;  %v100_v17 = vsel %vm96_vm0, %v68_v10, 0.0 }
  0x3f   :  { %v86_v20 = vcombine.high %v78_v13, %v78_v13  ;;  %v104_v23 = vsel %vm96_vm0, %v78_v13, 0.0  ;;  %v87_v25 = vcombine.high %v85_v19, %v85_v19  ;;  %v108_v28 = vsel %vm96_vm0, %v85_v19, 0.0 }
  0x40   :  { %v98_v16 = vsel %vm96_vm0, %v69_v11, 0.0  ;;  %v102_v21 = vsel %vm96_vm0, %v70_v15, 0.0  ;;  %v208_v11 = vsub.s32 0, %v576_v3  ;;  %v216_v13 = vsub.s32 2, %v576_v3  ;;  %v193_v15 = vld [vmem:[#allocation5] sm:$0xff] }
  0x41   :  { %v99_v18 = vadd.f32 %v98_v16, %v97_v14  ;;  %v106_v26 = vsel %vm96_vm0, %v86_v20, 0.0  ;;  %v110_v30 = vsel %vm96_vm0, %v87_v25, 0.0  ;;  %v224_v14 = vsub.s32 4, %v576_v3 }
  0x42   :  { %v220_v16 = vsub.s32 3, %v576_v3  ;;  %v232_v19 = vsub.s32 6, %v576_v3  ;;  %v236_v20 = vsub.s32 7, %v576_v3  ;;  %v217_v25 = vrot.slane %v193_v15, %v216_v13 }
  0x43   :  { %v101_v22 = vadd.f32 %v100_v17, %v99_v18  ;;  %v228_v17 = vsub.s32 5, %v576_v3 }
  0x45   :  { %v103_v24 = vadd.f32 %v102_v21, %v101_v22  ;;  %v298_v22 = vld [vmem:[#allocation7] sm:$0xff] }
  0x46   :  { %v303_v33 = vrot.slane %v298_v22, %v208_v11  ;;  %v319_v34 = vrot.slane %v298_v22, %v224_v14 }
  0x47   :  { %v105_v27 = vadd.f32 %v104_v23, %v103_v24  ;;  %v209_v23 = vrot.slane %v193_v15, %v208_v11  ;;  %v213_v24 = vrot.slane %v193_v15, %v212_v12 }
  0x49   :  { %v107_v29 = vadd.f32 %v106_v26, %v105_v27  ;;  %v225_v26 = vrot.slane %v193_v15, %v224_v14 }
  0x4b   :  { %v109_v31 = vadd.f32 %v108_v28, %v107_v29  ;;  %v221_v29 = vrot.slane %v193_v15, %v220_v16 }
  0x4d   :  { %v111_v32 = vadd.f32 %v110_v30, %v109_v31  ;;  %v229_v30 = vrot.slane %v193_v15, %v228_v17  ;;  %v233_v31 = vrot.slane %v193_v15, %v232_v19 }
  0x4f   :  { %112 = vadd.xlane.f32.xlu0 %v111_v32  ;;  %v237_v32 = vrot.slane %v193_v15, %v236_v20 }
  0xdc   :  { %v113_v37 = vpop.xlane.xlu0 %112 }
  0xdd   :  { %v114_v38 = vmul.f32 0.0009765625, %v113_v37 }
  0xdf   :  { %v122_v39 = vrot.slane %v114_v38, %v121_v36 }
  0xe1   :  { %v124_v40 = vsub.f32 %v50_v6, %v122_v39  ;;  %v125_v41 = vsub.f32 %v51_v7, %v122_v39  ;;  %v311_v39 = vrot.slane %v298_v22, %v216_v13 }
  0xe3   :  { %v126_v42 = vmul.f32 %v124_v40, %v124_v40  ;;  %v127_v43 = vmul.f32 %v125_v41, %v125_v41 }
  0xe5   :  { %v130_v44 = vcombine.high %v126_v42, %v126_v42  ;;  %v137_v45 = vrot.slane %v126_v42, %v579_v5  ;;  %v154_v48 = vrot.slane %v127_v43, %v579_v5  ;;  %v147_v52 = vcombine.high %v127_v43, %v127_v43 }
  0xe6   :  { %v323_v42 = vrot.slane %v298_v22, %v228_v17  ;;  %v327_v43 = vrot.slane %v298_v22, %v232_v19 }
  0xe7   :  { %v144_v46 = vrot.slane %v130_v44, %v579_v5  ;;  %v145_v47 = vcombine.high %v137_v45, %v137_v45  ;;  %v172_v49 = vsel %vm96_vm0, %v137_v45, 0.0  ;;  %v161_v56 = vrot.slane %v147_v52, %v579_v5 }
  0xe8   :  { %v162_v57 = vcombine.high %v154_v48, %v154_v48  ;;  %v179_v60 = vsel %vm96_vm0, %v154_v48, 0.0  ;;  %v315_v48 = vrot.slane %v298_v22, %v220_v16 }
  0xe9   :  { %v173_v50 = vsel %vm96_vm0, %v145_v47, 0.0  ;;  %v146_v51 = vcombine.high %v144_v46, %v144_v46  ;;  %v175_v54 = vsel %vm96_vm0, %v144_v46, 0.0  ;;  %v163_v62 = vcombine.high %v161_v56, %v161_v56 }
  0xea   :  { %v174_v53 = vadd.f32 %v173_v50, %v172_v49  ;;  %v181_v63 = vsel %vm96_vm0, %v162_v57, 0.0  ;;  %v183_v1 = vsel %vm96_vm0, %v161_v56, 0.0  ;;  %v331_v49 = vrot.slane %v298_v22, %v236_v20 }
  0xeb   :  { %v177_v58 = vsel %vm96_vm0, %v146_v51, 0.0  ;;  %v185_v4 = vsel %vm96_vm0, %v163_v62, 0.0 }
  0xec   :  { %v176_v55 = vadd.f32 %v175_v54, %v174_v53 }
  0xee   :  { %v178_v59 = vadd.f32 %v177_v58, %v176_v55 }
  0xf0   :  { %v180_v61 = vadd.f32 %v179_v60, %v178_v59 }
  0xf2   :  { %v182_v0 = vadd.f32 %v181_v63, %v180_v61 }
  0xf4   :  { %v184_v2 = vadd.f32 %v183_v1, %v182_v0 }
  0xf6   :  { %v186_v6 = vadd.f32 %v185_v4, %v184_v2 }
  0xf8   :  { %187 = vadd.xlane.f32.xlu0 %v186_v6 }
 0x185   :  { %v188_v7 = vpop.xlane.xlu0 %187 }
 0x186   :  { %v189_v8 = vmul.f32 0.0009765625, %v188_v7 }
 0x188   :  { %v190_v9 = vmax.f32 %v189_v8, 0.0 }
 0x18a   :  { %v191_v10 = vadd.f32 1e-05, %v190_v9 }
 0x18c   :  { %418 = vrsqrt.f32 %v191_v10 }
 0x196   :  { %v419_v18 = vpop.eup %418 }
 0x197   :  { %v201_v21 = vrot.slane %v419_v18, %v121_v36  ;;  %v307_v36 = vrot.slane %v298_v22, %v212_v12 }
 0x199   :  { %v203_v27 = vmul.f32 %v201_v21, %v124_v40  ;;  %v204_v28 = vmul.f32 %v201_v21, %v125_v41 }
 0x19b   :  { %v248_v35 = vcombine.high %v203_v27, %v203_v27  ;;  %v265_v37 = vcombine.high %v204_v28, %v204_v28  ;;  %v255_v38 = vrot.slane %v203_v27, %v579_v5  ;;  %v272_v3 = vrot.slane %v204_v28, %v579_v5 }
 0x19d   :  { %v262_v44 = vrot.slane %v248_v35, %v579_v5  ;;  %v263_v40 = vcombine.high %v255_v38, %v255_v38  ;;  %v279_v41 = vrot.slane %v265_v37, %v579_v5  ;;  %v280_v45 = vcombine.high %v272_v3, %v272_v3 }
 0x19e   :  { %v290_v46 = vmul.f32 %v255_v38, %v209_v23  ;;  %v294_v47 = vmul.f32 %v272_v3, %v225_v26 }
 0x19f   :  { %v264_v50 = vcombine.high %v262_v44, %v262_v44  ;;  %v281_v51 = vcombine.high %v279_v41, %v279_v41  ;;  %v291_v52 = vmul.f32 %v263_v40, %v213_v24  ;;  %v292_v53 = vmul.f32 %v262_v44, %v217_v25 }
 0x1a0   :  { %v295_v54 = vmul.f32 %v280_v45, %v229_v30  ;;  %v296_v55 = vmul.f32 %v279_v41, %v233_v31  ;;  %v340_v58 = vadd.f32 %v303_v33, %v290_v46  ;;  %v344_v61 = vadd.f32 %v319_v34, %v294_v47 }
 0x1a1   :  { %v293_v56 = vmul.f32 %v264_v50, %v221_v29  ;;  %v297_v57 = vmul.f32 %v281_v51, %v237_v32  ;;  %v341_v59 = vadd.f32 %v307_v36, %v291_v52  ;;  %v342_v60 = vadd.f32 %v311_v39, %v292_v53 }
 0x1a2   :  { %v345_v62 = vadd.f32 %v323_v42, %v295_v54  ;;  %v346_v0 = vadd.f32 %v327_v43, %v296_v55 }
 0x1a3   :  { %v343_v63 = vadd.f32 %v315_v48, %v293_v56  ;;  %v347_v1 = vadd.f32 %v331_v49, %v297_v57  ;;  %v356_v2 = vcombine.low %v340_v58, %v341_v59 }
 0x1a4   :  { %v373_v4 = vcombine.low %v344_v61, %v345_v62 }
 0x1a5   :  { %v357_v6 = vcombine.low %v342_v60, %v343_v63  ;;  %v374_v7 = vcombine.low %v346_v0, %v347_v1  ;;  %v364_v8 = vrot.slane %v356_v2, %v579_v5 }
 0x1a6   :  { %v381_v10 = vrot.slane %v373_v4, %v579_v5 }
 0x1a7   :  { %v371_v9 = vrot.slane %v357_v6, %v579_v5  ;;  %v388_v11 = vrot.slane %v374_v7, %v579_v5 }
 0x1a9   :  { %v372_v12 = vcombine.low %v364_v8, %v371_v9  ;;  %v389_v13 = vcombine.low %v381_v10, %v388_v11 }
 0x1ab   :  { %392 = vst [vmem:[#allocation8] sm:$0xff] %v372_v12  ;;  %393 = vst [vmem:[#allocation8 + $0x8] sm:$0xff] %v389_v13 }
 0x1ac   :  { %497 = shalt.err (!%p494_p0)
}
 0x1ad   :  { %s498_s23 = scalar_lea.hbm %s637_s3, 256 }
 0x1ae   :  { %p499_p1 = scmp.ne.s32.totalorder %s637_s3, %s498_s23  ;;  %p502_p2 = scmp.lt.u32.totalorder %s498_s23, %s637_s3 }
 0x1b0   :  { %p504_p3 = pnand %p502_p2, %p499_p1 }
 0x1b2   :  { %507 = shalt.err (!%p504_p3)
}
 0x1b3   :  { %403 = dma.vmem_to_hbm [thread:$0]  %s401_s19, 256, %s637_s3, [#allocation4]  }
 0x1b4   :  { %512 = dma.done.wait [#allocation4], 256  }
 0x1b5   :  { %513 = vsyncadd [#allocation4], 4294967040 }
 0x1b6   :  { %407 = vsyncpa [#allocation3], 1 }
 0x1b7   :  { %408 = vsyncpa [#allocation6], 1 }
 0x1b8   :  { %409 = vsyncpa [#allocation4], 1 }

</bundles_post_ra>
